<compile_context>
chip_gen: v7x
topology: tpu7x:2x2x1
jax: 0.10.0
libtpu: 0.0.40
codegen_flags: <defaults>
</compile_context>

<pallas_src>
import jax
import jax.numpy as jnp
from jax.experimental import pallas as pl
from jax.experimental.pallas import tpu as pltpu


def _round_up(n, m):
    return ((n + m - 1) // m) * m


def _lora_qkv_kernel(x_ref, wqkv_ref, bqkv_ref, a_ref, bblk_ref, out_ref):
    """Base qkv matmul + fused LoRA q/v branches; single full-width lane-dense store."""
    x = x_ref[...]                                             # (tile_n, dim), compute dtype

    # Base qkv projection on the MXU, f32 accumulation.
    base = jnp.dot(x, wqkv_ref[...], preferred_element_type=jnp.float32)

    # Fused LoRA branches:
    #   a_ref    = [A_q^T | A_v^T | 0]                              (dim, r_pad)
    #   bblk_ref = [[s*B_q^T,  0,  0      ],
    #               [   0,     0,  s*B_v^T],
    #               [   0,     0,  0      ]]                        (r_pad, tile_out)
    # The zero middle block makes `lora` span the full qkv width, so the epilogue is a
    # single unmasked store. xa stays f32 for the second dot (K is tiny, precision win).
    # TODO(synk): dropout between A and B is identity here (inference / eval mode).
    xa = jnp.dot(x, a_ref[...], preferred_element_type=jnp.float32)
    lora = jnp.dot(xa, bblk_ref[...], preferred_element_type=jnp.float32)

    out_ref[...] = (base + bqkv_ref[...] + lora).astype(out_ref.dtype)


def prepare_lora_qkv_params(raw, *, rank, alpha=1.0, compute_dtype=jnp.bfloat16):
    """One-time parameter preprocessing, hoisted out of the per-call forward.

    raw:
      wqkv_t:     (dim, 3*dim_out)  == torch qkv.weight.T
      bqkv:       (3*dim_out,)      == torch qkv.bias
      aq_t, av_t: (dim, rank)       == lora_A_{q,v}.weight.T
      bq_t, bv_t: (rank, dim_out)   == lora_B_{q,v}.weight.T
    """
    wqkv_t = jnp.asarray(raw["wqkv_t"])
    dim, three_dim_out = wqkv_t.shape
    dim_out = three_dim_out // 3
    scaling = alpha / rank

    # Lane-dense rank dimension (>= 128): free MXU-pass-wise, removes narrow layouts.
    r_pad = max(128, _round_up(2 * rank, 128))

    a_cat = jnp.zeros((dim, r_pad), jnp.float32)
    a_cat = a_cat.at[:, :rank].set(jnp.asarray(raw["aq_t"], jnp.float32))
    a_cat = a_cat.at[:, rank:2 * rank].set(jnp.asarray(raw["av_t"], jnp.float32))

    # Block "diagonal" B with a zero k block; alpha/rank folded in. Kept f32 so the
    # scaling does not double-round and the (tiny) second matmul stays f32.
    b_blk = jnp.zeros((r_pad, 3 * dim_out), jnp.float32)
    b_blk = b_blk.at[:rank, :dim_out].set(jnp.asarray(raw["bq_t"], jnp.float32) * scaling)
    b_blk = b_blk.at[rank:2 * rank, 2 * dim_out:].set(
        jnp.asarray(raw["bv_t"], jnp.float32) * scaling)

    return {
        "wqkv_t": wqkv_t.astype(compute_dtype),
        "bqkv": jnp.asarray(raw["bqkv"], jnp.float32).reshape(1, 3 * dim_out),
        "a_cat": a_cat.astype(compute_dtype),
        "b_blk": b_blk,                               # f32
        "dim": int(dim),
        "dim_out": int(dim_out),
        "r_pad": int(r_pad),
        "compute_dtype": compute_dtype,
    }


def lora_qkv_hiera(x, params, *, num_heads, tile_n=256, tile_out=None,
                   vmem_limit_bytes=None):
    """Pallas forward for LoRA_qkv_hiera (eval mode). x: (B, H, W, dim)."""
    B, H, W, dim = x.shape
    assert dim == params["dim"]
    dim_out = params["dim_out"]
    r_pad = params["r_pad"]
    head_dim = dim_out // num_heads
    compute_dtype = params["compute_dtype"]
    out_dtype = x.dtype

    wqkv_t = params["wqkv_t"]
    bqkv = params["bqkv"]
    a_cat = params["a_cat"]
    b_blk = params["b_blk"]

    N = B * H * W
    out_cols = 3 * dim_out

    # No wrapper-side pad/slice: ragged last row tile is masked by Pallas (OOB input
    # rows only feed OOB output rows, which are never stored).
    xf = x.reshape(N, dim)
    if xf.dtype != compute_dtype:
        xf = xf.astype(compute_dtype)

    tile_n = min(tile_n, _round_up(N, 8))
    grid_n = pl.cdiv(N, tile_n)

    if tile_out is None:
        tile_out = out_cols          # weights fully resident (default)
    grid_c = pl.cdiv(out_cols, tile_out)
    # TODO(synk): on v7x pick tile_out (multiple of 256) so the (dim, tile_out) weight
    # slab fits 64 MiB VMEM and grid_n * grid_c >= 2 so both TensorCores get work.

    # Constant-index operands are DMA'd once; single-buffer them to save VMEM.
    # Column-tiled operands (grid_c > 1) keep default double buffering.
    w_mode = pl.Buffered(1) if grid_c == 1 else None
    const_mode = pl.Buffered(1)

    in_specs = [
        pl.BlockSpec((tile_n, dim), lambda i, j: (i, 0)),                              # x rows
        pl.BlockSpec((dim, tile_out), lambda i, j: (0, j), pipeline_mode=w_mode),       # Wqkv^T
        pl.BlockSpec((1, tile_out), lambda i, j: (0, j), pipeline_mode=w_mode),         # bias
        pl.BlockSpec((dim, r_pad), lambda i, j: (0, 0), pipeline_mode=const_mode),      # [A_q^T|A_v^T]
        pl.BlockSpec((r_pad, tile_out), lambda i, j: (0, j), pipeline_mode=w_mode),     # blockdiag B
    ]
    out_specs = pl.BlockSpec((tile_n, tile_out), lambda i, j: (i, j))

    if vmem_limit_bytes is None:
        w_item = jnp.dtype(compute_dtype).itemsize
        weight_bufs = 1 if grid_c == 1 else 2
        weight_bytes = ((dim * tile_out + tile_out) * w_item
                        + dim * r_pad * w_item + r_pad * tile_out * 4)
        io_bytes = 2 * (tile_n * dim * w_item
                        + tile_n * tile_out * jnp.dtype(out_dtype).itemsize)
        scratch_bytes = 3 * tile_n * tile_out * 4          # f32 base/lora/epilogue temps
        est = weight_bufs * weight_bytes + io_bytes + scratch_bytes + (4 << 20)
        vmem_limit_bytes = int(min(max(est, 32 << 20), 96 << 20))

    cost = pl.CostEstimate(
        flops=(2 * N * dim * out_cols            # base qkv matmul
               + 2 * N * dim * r_pad             # fused LoRA A matmul
               + 2 * N * r_pad * out_cols),      # fused LoRA B matmul
        transcendentals=0,
        bytes_accessed=(xf.size * xf.dtype.itemsize
                        + wqkv_t.size * wqkv_t.dtype.itemsize
                        + bqkv.size * 4
                        + a_cat.size * a_cat.dtype.itemsize
                        + b_blk.size * 4
                        + N * out_cols * jnp.dtype(out_dtype).itemsize),
    )

    out = pl.pallas_call(
        _lora_qkv_kernel,
        out_shape=jax.ShapeDtypeStruct((N, out_cols), out_dtype),
        grid_spec=pltpu.PrefetchScalarGridSpec(
            num_scalar_prefetch=0,
            grid=(grid_n, grid_c),
            in_specs=in_specs,
            out_specs=out_specs,
        ),
        compiler_params=pltpu.CompilerParams(
            dimension_semantics=("parallel", "parallel"),
            vmem_limit_bytes=vmem_limit_bytes,
        ),
        cost_estimate=cost,
    )(xf, wqkv_t, bqkv, a_cat, b_blk)

    # (N, 3*dim_out) -> (B, H*W, 3, num_heads, head_dim); columns are [q | k | v].
    return out.reshape(B, H * W, 3, num_heads, head_dim)


def _reference(x, raw, *, num_heads, rank, alpha=1.0):
    """Plain-JAX f32 reference mirroring the PyTorch forward (dropout = identity)."""
    B, H, W, dim = x.shape
    dim_out = raw["bq_t"].shape[1]
    head_dim = dim_out // num_heads
    scaling = alpha / rank
    xf = x.reshape(B * H * W, dim).astype(jnp.float32)

    qkv = xf @ raw["wqkv_t"].astype(jnp.float32) + raw["bqkv"].astype(jnp.float32)
    lq = (xf @ raw["aq_t"].astype(jnp.float32)) @ raw["bq_t"].astype(jnp.float32) * scaling
    lv = (xf @ raw["av_t"].astype(jnp.float32)) @ raw["bv_t"].astype(jnp.float32) * scaling

    qkv = qkv.reshape(B, H * W, 3, num_heads, head_dim)
    lq = lq.reshape(B, H * W, num_heads, head_dim)
    lv = lv.reshape(B, H * W, num_heads, head_dim)
    q = qkv[:, :, 0] + lq
    k = qkv[:, :, 1]
    v = qkv[:, :, 2] + lv
    return jnp.stack([q, k, v], axis=2).astype(x.dtype)


if __name__ == "__main__":
    # Small shapes consistent with the module's forward contract.
    B, H, W = 2, 16, 16            # N = B*H*W = 512 -> 2 row tiles of 256
    dim, dim_out = 32, 64
    num_heads, rank, alpha = 2, 4, 1.0

    key = jax.random.PRNGKey(0)
    kx, kw, kb, ka1, ka2, kb1, kb2 = jax.random.split(key, 7)

    x = jax.random.normal(kx, (B, H, W, dim), dtype=jnp.float32)

    # Kaiming-uniform (a=sqrt(5)) bound for A matrices: 1/sqrt(fan_in).
    bound_a = 1.0 / jnp.sqrt(dim)
    raw = {
        "wqkv_t": jax.random.normal(kw, (dim, 3 * dim_out), jnp.float32) * 0.02,
        "bqkv": jax.random.normal(kb, (3 * dim_out,), jnp.float32) * 0.02,
        "aq_t": jax.random.uniform(ka1, (dim, rank), jnp.float32, -bound_a, bound_a),
        "av_t": jax.random.uniform(ka2, (dim, rank), jnp.float32, -bound_a, bound_a),
        # reset_parameters() zeroes the B matrices; use small nonzero values so the
        # LoRA path is actually exercised.
        "bq_t": jax.random.normal(kb1, (rank, dim_out), jnp.float32) * 0.02,
        "bv_t": jax.random.normal(kb2, (rank, dim_out), jnp.float32) * 0.02,
    }

    ref = _reference(x, raw, num_heads=num_heads, rank=rank, alpha=alpha)

    # 1) f32 compute path, evenly divisible row grid -> tight tolerance.
    p32 = prepare_lora_qkv_params(raw, rank=rank, alpha=alpha, compute_dtype=jnp.float32)
    out32 = jax.block_until_ready(lora_qkv_hiera(x, p32, num_heads=num_heads, tile_n=256))
    assert out32.shape == (B, H * W, 3, num_heads, dim_out // num_heads), out32.shape
    assert jnp.allclose(out32, ref, atol=1e-4, rtol=1e-4), \
        float(jnp.max(jnp.abs(out32 - ref)))

    # 2) default bf16 MXU operands (f32 accumulation) -> relaxed tolerance.
    pbf = prepare_lora_qkv_params(raw, rank=rank, alpha=alpha)   # bf16 by default
    outbf = jax.block_until_ready(lora_qkv_hiera(x, pbf, num_heads=num_heads, tile_n=256))
    assert jnp.allclose(outbf.astype(jnp.float32), ref, atol=3e-2, rtol=3e-2), \
        float(jnp.max(jnp.abs(outbf.astype(jnp.float32) - ref)))

    # 3) ragged last row tile (N=32 < tile_n) + column tiling (tile_out=128 over 192).
    x_small = jax.random.normal(kx, (2, 4, 4, dim), dtype=jnp.float32)
    ref_small = _reference(x_small, raw, num_heads=num_heads, rank=rank, alpha=alpha)
    out_small = jax.block_until_ready(
        lora_qkv_hiera(x_small, p32, num_heads=num_heads, tile_n=256, tile_out=128))
    assert out_small.shape == ref_small.shape, out_small.shape
    assert jnp.allclose(out_small, ref_small, atol=1e-4, rtol=1e-4), \
        float(jnp.max(jnp.abs(out_small - ref_small)))

    print("KERNEL_OK")
</pallas_src>

<mosaic_0001>
module attributes {stable_mosaic.version = 11 : i64} {
  func.func @_lora_qkv_kernel(%arg0: i32, %arg1: i32, %arg2: memref<256x32xf32, #tpu.memory_space<vmem>>, %arg3: memref<32x192xf32, #tpu.memory_space<vmem>>, %arg4: memref<1x192xf32, #tpu.memory_space<vmem>>, %arg5: memref<32x128xf32, #tpu.memory_space<vmem>>, %arg6: memref<128x192xf32, #tpu.memory_space<vmem>>, %arg7: memref<256x192xf32, #tpu.memory_space<vmem>>) attributes {dimension_semantics = [#tpu.dimension_semantics<parallel>, #tpu.dimension_semantics<parallel>], iteration_bounds = array<i64: 2, 1>, scalar_prefetch = 0 : i64, scratch_operands = 0 : i64, tpu.core_type = #tpu.core_type<tc>, window_params = [{transform_indices = @transform_0, window_bounds = array<i64: 256, 32>}, {pipeline_mode = #tpu.pipeline_mode<synchronous>, transform_indices = @transform_1, window_bounds = array<i64: 32, 192>}, {pipeline_mode = #tpu.pipeline_mode<synchronous>, transform_indices = @transform_2, window_bounds = array<i64: 1, 192>}, {pipeline_mode = #tpu.pipeline_mode<synchronous>, transform_indices = @transform_3, window_bounds = array<i64: 32, 128>}, {pipeline_mode = #tpu.pipeline_mode<synchronous>, transform_indices = @transform_4, window_bounds = array<i64: 128, 192>}, {transform_indices = @transform_5, window_bounds = array<i64: 256, 192>}]} {
    %c0 = arith.constant 0 : index
    %c0_0 = arith.constant 0 : index
    %0 = vector.load %arg2[%c0, %c0_0] : memref<256x32xf32, #tpu.memory_space<vmem>>, vector<256x32xf32>
    %c0_1 = arith.constant 0 : index
    %c0_2 = arith.constant 0 : index
    %1 = vector.load %arg3[%c0_1, %c0_2] : memref<32x192xf32, #tpu.memory_space<vmem>>, vector<32x192xf32>
    %cst = arith.constant dense<0.000000e+00> : vector<256x192xf32>
    %2 = tpu.matmul %0, %1, %cst {dimension_numbers = #tpu.dot_dimension_numbers<[1], [0], [0], [1], [0, 0, 1, 1], [], []>} : vector<256x32xf32>, vector<32x192xf32>, vector<256x192xf32> -> vector<256x192xf32>
    %c0_3 = arith.constant 0 : index
    %c0_4 = arith.constant 0 : index
    %3 = vector.load %arg5[%c0_3, %c0_4] : memref<32x128xf32, #tpu.memory_space<vmem>>, vector<32x128xf32>
    %cst_5 = arith.constant dense<0.000000e+00> : vector<256x128xf32>
    %4 = tpu.matmul %0, %3, %cst_5 {dimension_numbers = #tpu.dot_dimension_numbers<[1], [0], [0], [1], [0, 0, 1, 1], [], []>} : vector<256x32xf32>, vector<32x128xf32>, vector<256x128xf32> -> vector<256x128xf32>
    %c0_6 = arith.constant 0 : index
    %c0_7 = arith.constant 0 : index
    %5 = vector.load %arg6[%c0_6, %c0_7] : memref<128x192xf32, #tpu.memory_space<vmem>>, vector<128x192xf32>
    %cst_8 = arith.constant dense<0.000000e+00> : vector<256x192xf32>
    %6 = tpu.matmul %4, %5, %cst_8 {dimension_numbers = #tpu.dot_dimension_numbers<[1], [0], [0], [1], [0, 0, 1, 1], [], []>} : vector<256x128xf32>, vector<128x192xf32>, vector<256x192xf32> -> vector<256x192xf32>
    %c0_9 = arith.constant 0 : index
    %c0_10 = arith.constant 0 : index
    %7 = vector.load %arg4[%c0_9, %c0_10] : memref<1x192xf32, #tpu.memory_space<vmem>>, vector<1x192xf32>
    %8 = vector.broadcast %7 : vector<1x192xf32> to vector<256x192xf32>
    %9 = arith.addf %2, %8 : vector<256x192xf32>
    %10 = arith.addf %9, %6 : vector<256x192xf32>
    %c0_11 = arith.constant 0 : index
    %c0_12 = arith.constant 0 : index
    %11 = vector.load %arg7[%c0_11, %c0_12] : memref<256x192xf32, #tpu.memory_space<vmem>>, vector<256x192xf32>
    tpu.vector_store %arg7[%c0_11, %c0_12], %10 {strides = array<i32>} : memref<256x192xf32, #tpu.memory_space<vmem>>, vector<256x192xf32>,
    return
  }
  func.func @transform_0(%arg0: i32, %arg1: i32) -> (i32, i32) {
    %c0_i32 = arith.constant 0 : i32
    %c0_i32_0 = arith.constant 0 : i32
    return %arg0, %c0_i32 : i32, i32
  }
  func.func @transform_1(%arg0: i32, %arg1: i32) -> (i32, i32) {
    %c0_i32 = arith.constant 0 : i32
    %c0_i32_0 = arith.constant 0 : i32
    return %c0_i32, %arg1 : i32, i32
  }
  func.func @transform_2(%arg0: i32, %arg1: i32) -> (i32, i32) {
    %c0_i32 = arith.constant 0 : i32
    %c0_i32_0 = arith.constant 0 : i32
    return %c0_i32, %arg1 : i32, i32
  }
  func.func @transform_3(%arg0: i32, %arg1: i32) -> (i32, i32) {
    %c0_i32 = arith.constant 0 : i32
    %c0_i32_0 = arith.constant 0 : i32
    %c0_i32_1 = arith.constant 0 : i32
    return %c0_i32, %c0_i32_0 : i32, i32
  }
  func.func @transform_4(%arg0: i32, %arg1: i32) -> (i32, i32) {
    %c0_i32 = arith.constant 0 : i32
    %c0_i32_0 = arith.constant 0 : i32
    return %c0_i32, %arg1 : i32, i32
  }
  func.func @transform_5(%arg0: i32, %arg1: i32) -> (i32, i32) {
    %c0_i32 = arith.constant 0 : i32
    return %arg0, %arg1 : i32, i32
  }
}

</mosaic_0001>

<bundles_post_ra>
// kernel: tpu_custom_call.1
= control target key start
LH: loop header
LB: loop body
LE: loop exit
PB: predicated region body
PF: predicated region fallthrough
CT: control target
= control target key end

     0   :  { %s1939_s18 = smov 0   ;;  %s1941_s19 = smov 0   ;;  %s2717_s0 = inlined_call_operand.vmem [shape: f32[512,32], index: 0, kind: input, shape index: {}]   ;;  %s2718_s1 = inlined_call_operand.vmem [shape: f32[32,192], index: 1, kind: input, shape index: {}]   ;;  %s2719_s2 = inlined_call_operand.vmem [shape: f32[1,192], index: 2, kind: input, shape index: {}]   ;;  %s2720_s3 = inlined_call_operand.vmem [shape: f32[32,128], index: 3, kind: input, shape index: {}]   ;;  %s2721_s4 = inlined_call_operand.vmem [shape: f32[128,192], index: 4, kind: input, shape index: {}]   ;;  %s2722_s5 = inlined_call_operand.vmem [shape: f32[512,192], index: 5, kind: output, shape index: {}]  }
   0x1   :  { %s1943_s20 = smov 0  }
   0x2 LB: > { %s27_s21 = sadd.s32 1, %s1902_s19  ;;  %p1502_p0 = scmp.ge.s32.totalorder %s1906_s20, 1  ;;  %s1906_s20 = sphi %s1943_s20, %s15_s20   ;;  %s1902_s19 = sphi %s1941_s19, %s2724_s19   ;;  %s1898_s18 = sphi %s1939_s18, %s2723_s18  }
   0x3   : > { %p29_p1 = scmp.ge.s32.totalorder %s27_s21, 2  ;;  %p234_p2 = scmp.lt.s32.totalorder %s1906_s20, 3 }
   0x5   : > { %s2726_s21 = smov (%p29_p1, %s27_s21), 0  ;;  %p235_p3 = pnand %p1502_p0, %p234_p2 }
   0x6   : > { %v356_v0 = vld [vmem:[%s2720_s3] sm:$0xff] (!%p235_p3)  ;;  %v357_v1 = vld [vmem:[%s2720_s3 + $0x8] sm:$0xff] (!%p235_p3)  ;;  %v358_v2 = vld [vmem:[%s2720_s3 + $0x10] sm:$0xff] (!%p235_p3)  ;;  %s1503_s28 = sshll.u32 (!%p235_p3), %s1898_s18, 5  ;;  %vm360_vm0 = vcmask (!%p235_p3), 261120   ;;  %vm1305_vm1 = vcmask (!%p235_p3), 523264  }
   0x7   : > { %238 = sbr.rel (%p235_p3) target bundleno = 644 (0x284), region = 40  ;;  %v1667_v3 = vpack.c.bf16 (!%p235_p3), %v357_v1, %v356_v0  ;;  %v359_v4 = vld [vmem:[%s2720_s3 + $0x18] sm:$0xff] (!%p235_p3)  ;;  %p282_p4 = scmp.lt.s32.totalorder (!%p235_p3), %s1503_s28, 63  ;;  %v683_v5 = vld [vmem:[%s2721_s4 + $0x8] sm:$0xff] (!%p235_p3)  ;;  %v682_v9 = vld [vmem:[%s2721_s4] sm:$0xff] (!%p235_p3) }
   0x8   : > { %v685_v6 = vld [vmem:[%s2721_s4 + $0x18] sm:$0xff] (!%p235_p3)  ;;  %v1671_v7 = vpack.c.bf16 (!%p235_p3), %v359_v4, %v358_v2  ;;  %v684_v10 = vld [vmem:[%s2721_s4 + $0x10] sm:$0xff] (!%p235_p3)  ;;  %v687_v11 = vld [vmem:[%s2721_s4 + $0x28] sm:$0xff] (!%p235_p3) }
   0x9   : > { %v1675_v8 = vpack.c.bf16 (!%p235_p3), %v685_v6, %v683_v5  ;;  %1668 = vmatprep.subr.bf16.mxu0 (!%p235_p3), %v1667_v3  ;;  %v1677_v12 = vpack.c.bf16 (!%p235_p3), %v684_v10, %v682_v9  ;;  %v689_v13 = vld [vmem:[%s2721_s4 + $0x38] sm:$0xff] (!%p235_p3)  ;;  %v686_v15 = vld [vmem:[%s2721_s4 + $0x20] sm:$0xff] (!%p235_p3)  ;;  %v688_v16 = vld [vmem:[%s2721_s4 + $0x30] sm:$0xff] (!%p235_p3) }
   0xa   : > { %1670 = vmatpush3.bf16.msra.mxu0 (!%p235_p3), %v1667_v3  ;;  %v1679_v14 = vpack.c.bf16 (!%p235_p3), %v689_v13, %v687_v11  ;;  %v691_v17 = vld [vmem:[%s2721_s4 + $0x48] sm:$0xff] (!%p235_p3)  ;;  %v693_v18 = vld [vmem:[%s2721_s4 + $0x58] sm:$0xff] (!%p235_p3)  ;;  %v1681_v20 = vpack.c.bf16 (!%p235_p3), %v688_v16, %v686_v15  ;;  %v690_v23 = vld [vmem:[%s2721_s4 + $0x40] sm:$0xff] (!%p235_p3) }
   0xb   : > { %1715 = vmatprep.subr.bf16.mxu1 (!%p235_p3), %v1675_v8  ;;  %1672 = vmatprep.subr.bf16.mxu0 (!%p235_p3), %v1671_v7  ;;  %v1683_v22 = vpack.c.bf16 (!%p235_p3), %v693_v18, %v691_v17  ;;  %v692_v24 = vld [vmem:[%s2721_s4 + $0x50] sm:$0xff] (!%p235_p3)  ;;  %v695_v26 = vld [vmem:[%s2721_s4 + $0x68] sm:$0xff] (!%p235_p3)  ;;  %v697_v27 = vld [vmem:[%s2721_s4 + $0x78] sm:$0xff] (!%p235_p3) }
   0xc   : > { %1723 = vmatpush1.bf16.msra.mxu1 (!%p235_p3), %v1677_v12  ;;  %v1685_v28 = vpack.c.bf16 (!%p235_p3), %v692_v24, %v690_v23  ;;  %v1687_v30 = vpack.c.bf16 (!%p235_p3), %v697_v27, %v695_v26  ;;  %v694_v31 = vld [vmem:[%s2721_s4 + $0x60] sm:$0xff] (!%p235_p3)  ;;  %v696_v32 = vld [vmem:[%s2721_s4 + $0x70] sm:$0xff] (!%p235_p3)  ;;  %v699_v36 = vld [vmem:[%s2721_s4 + $0x88] sm:$0xff] (!%p235_p3)  ;;  %v1908_v24 = vmov (!%p235_p3), 0.0  }
   0xd   : > { %1716 = vmatprep.subr.bf16.mxu1 (!%p235_p3), %v1679_v14  ;;  %v1689_v34 = vpack.c.bf16 (!%p235_p3), %v696_v32, %v694_v31  ;;  %v701_v38 = vld [vmem:[%s2721_s4 + $0x98] sm:$0xff] (!%p235_p3)  ;;  %v698_v39 = vld [vmem:[%s2721_s4 + $0x80] sm:$0xff] (!%p235_p3)  ;;  %v700_v40 = vld [vmem:[%s2721_s4 + $0x90] sm:$0xff] (!%p235_p3)  ;;  %940 = vmatprep.mubr.f32.mxu1 (!%p235_p3), %v1908_v24 }
   0xe   : > { %s2728_s28 = smov (!%p282_p4, %s1503_s28), 63  ;;  %1674 = vmatpush3.bf16.msra.mxu0 %v1671_v7  ;;  %v703_v41 = vld [vmem:[%s2721_s4 + $0xa8] sm:$0xff]  ;;  %v1691_v42 = vpack.c.bf16 %v701_v38, %v699_v36  ;;  %v705_v43 = vld [vmem:[%s2721_s4 + $0xb8] sm:$0xff]  ;;  %v1693_v45 = vpack.c.bf16 %v700_v40, %v698_v39  ;;  %v702_v48 = vld [vmem:[%s2721_s4 + $0xa0] sm:$0xff] }
   0xf   : > { %s1504_s25 = sshll.u32 %s2728_s28, 3  ;;  %1676 = vmatprep.subr.bf16.mxu0 %v1675_v8  ;;  %v1695_v47 = vpack.c.bf16 %v705_v43, %v703_v41  ;;  %v704_v49 = vld [vmem:[%s2721_s4 + $0xb0] sm:$0xff]  ;;  %v707_v50 = vld [vmem:[%s2721_s4 + $0xc8] sm:$0xff]  ;;  %v709_v51 = vld [vmem:[%s2721_s4 + $0xd8] sm:$0xff]  ;;  %s1574_s10 = sshll.u32 %s2728_s28, 4 }
  0x10   : > { %s2005_s8 = scalar_lea.vmem %s2717_s0, %s1504_s25  ;;  %1724 = vmatpush1.bf16.msra.mxu1 %v1681_v20  ;;  %v1697_v53 = vpack.c.bf16 %v704_v49, %v702_v48  ;;  %v1699_v55 = vpack.c.bf16 %v709_v51, %v707_v50  ;;  %v706_v56 = vld [vmem:[%s2721_s4 + $0xc0] sm:$0xff]  ;;  %v708_v57 = vld [vmem:[%s2721_s4 + $0xd0] sm:$0xff]  ;;  %v711_v58 = vld [vmem:[%s2721_s4 + $0xe8] sm:$0xff]  ;;  %s2466_s13 = scalar_lea.vmem %s2722_s5, %s1574_s10 }
  0x11   : > { %v2008_v19 = vld [vmem:[%s2005_s8] sm:$0xff]  ;;  %v2013_v21 = vld [vmem:[%s2005_s8 + $0x8] sm:$0xff]  ;;  %v2022_v25 = vld [vmem:[%s2005_s8 + $0x10] sm:$0xff]  ;;  %1717 = vmatprep.subr.bf16.mxu1 %v1683_v22  ;;  %v1701_v61 = vpack.c.bf16 %v708_v57, %v706_v56 }
  0x12   : > { %1619 = vmatprep.mubr.msk.f32.mxu0 %vm360_vm0, %v2008_v19  ;;  %v2035_v29 = vld [vmem:[%s2005_s8 + $0x18] sm:$0xff]  ;;  %v2044_v33 = vld [vmem:[%s2005_s8 + $0x20] sm:$0xff]  ;;  %v2051_v35 = vld [vmem:[%s2005_s8 + $0x28] sm:$0xff] }
  0x13   : > { %1620 = vmatmul.mubr.msk.f32.vlgmr.msra.gmra.mrb[0].mxu0 %vm360_vm0, %v2013_v21  ;;  %v2057_v37 = vld [vmem:[%s2005_s8 + $0x30] sm:$0xff]  ;;  %v2079_v44 = vld [vmem:[%s2005_s8 + $0x38] sm:$0xff]  ;;  %v2082_v46 = vld [vmem:[%s2005_s8 + $0x40] sm:$0xff] }
  0x14   : > { %1622 = vmatprep.mubr.msk.f32.mxu0 %vm360_vm0, %v2022_v25  ;;  %1678 = vmatpush1.bf16.msra.mxu0 %v1677_v12  ;;  %v2101_v52 = vld [vmem:[%s2005_s8 + $0x48] sm:$0xff]  ;;  %v2104_v54 = vld [vmem:[%s2005_s8 + $0x50] sm:$0xff]  ;;  %v713_v59 = vld [vmem:[%s2721_s4 + $0xf8] sm:$0xff] }
  0x15   : > { %1680 = vmatprep.subr.bf16.mxu0 %v1679_v14  ;;  %1725 = vmatpush1.bf16.msra.mxu1 %v1685_v28  ;;  %v2123_v60 = vld [vmem:[%s2005_s8 + $0x58] sm:$0xff]  ;;  %v2126_v62 = vld [vmem:[%s2005_s8 + $0x60] sm:$0xff]  ;;  %v1703_v63 = vpack.c.bf16 %v713_v59, %v711_v58  ;;  %v712_v1 = vld [vmem:[%s2721_s4 + $0xf0] sm:$0xff] }
  0x16   : > { %1718 = vmatprep.subr.bf16.mxu1 %v1687_v30  ;;  %v710_v0 = vld [vmem:[%s2721_s4 + $0xe0] sm:$0xff]  ;;  %v2139_v2 = vld [vmem:[%s2005_s8 + $0x68] sm:$0xff]  ;;  %v2142_v4 = vld [vmem:[%s2005_s8 + $0x70] sm:$0xff] }
  0x17   : > { %1623 = vmatmul.mubr.msk.f32.gmra.mrb[2].mxu0 %vm360_vm0, %v2035_v29  ;;  %v1705_v3 = vpack.c.bf16 %v712_v1, %v710_v0  ;;  %v2149_v5 = vld [vmem:[%s2005_s8 + $0x78] sm:$0xff]  ;;  %v2152_v6 = vld [vmem:[%s2005_s8 + $0x80] sm:$0xff]  ;;  %v2159_v7 = vld [vmem:[%s2005_s8 + $0x88] sm:$0xff] }
  0x18   : > { %1625 = vmatprep.mubr.msk.f32.mxu0 %vm360_vm0, %v2044_v33  ;;  %1682 = vmatpush1.bf16.msra.mxu0 %v1681_v20  ;;  %v2162_v8 = vld [vmem:[%s2005_s8 + $0x90] sm:$0xff]  ;;  %v2169_v9 = vld [vmem:[%s2005_s8 + $0x98] sm:$0xff]  ;;  %v2172_v10 = vld [vmem:[%s2005_s8 + $0xa0] sm:$0xff] }
  0x19   : > { %1684 = vmatprep.subr.bf16.mxu0 %v1683_v22  ;;  %1726 = vmatpush1.bf16.msra.mxu1 %v1689_v34  ;;  %v2179_v11 = vld [vmem:[%s2005_s8 + $0xa8] sm:$0xff]  ;;  %v2182_v12 = vld [vmem:[%s2005_s8 + $0xb0] sm:$0xff]  ;;  %v2189_v13 = vld [vmem:[%s2005_s8 + $0xb8] sm:$0xff] }
  0x1a   : > { %1719 = vmatprep.subr.bf16.mxu1 %v1691_v42  ;;  %v2192_v14 = vld [vmem:[%s2005_s8 + $0xc0] sm:$0xff]  ;;  %v2199_v15 = vld [vmem:[%s2005_s8 + $0xc8] sm:$0xff]  ;;  %v2202_v16 = vld [vmem:[%s2005_s8 + $0xd0] sm:$0xff] }
  0x1b   : > { %1626 = vmatmul.mubr.msk.f32.gmra.mrb[4].mxu0 %vm360_vm0, %v2051_v35  ;;  %v2209_v17 = vld [vmem:[%s2005_s8 + $0xd8] sm:$0xff]  ;;  %v2212_v18 = vld [vmem:[%s2005_s8 + $0xe0] sm:$0xff]  ;;  %v2219_v20 = vld [vmem:[%s2005_s8 + $0xe8] sm:$0xff] }
  0x1c   : > { %1628 = vmatprep.mubr.msk.f32.mxu0 %vm360_vm0, %v2057_v37  ;;  %1686 = vmatpush1.bf16.msra.mxu0 %v1685_v28  ;;  %v2222_v22 = vld [vmem:[%s2005_s8 + $0xf0] sm:$0xff]  ;;  %v2229_v23 = vld [vmem:[%s2005_s8 + $0xf8] sm:$0xff]  ;;  %v349_v26 = vld [vmem:[%s2718_s1 + $0x8] sm:$0xff] }
  0x1d   : > { %1688 = vmatprep.subr.bf16.mxu0 %v1687_v30  ;;  %1727 = vmatpush1.bf16.msra.mxu1 %v1693_v45  ;;  %v351_v27 = vld [vmem:[%s2718_s1 + $0x18] sm:$0xff]  ;;  %v350_v0 = vld [vmem:[%s2718_s1 + $0x10] sm:$0xff] }
  0x1e   : > { %1720 = vmatprep.subr.bf16.mxu1 %v1695_v47  ;;  %v1707_v28 = vpack.c.bf16 %v351_v27, %v349_v26  ;;  %v353_v26 = vld [vmem:[%s2718_s1 + $0x28] sm:$0xff]  ;;  %v355_v27 = vld [vmem:[%s2718_s1 + $0x38] sm:$0xff] }
  0x1f   : > { %1629 = vmatmul.mubr.msk.f32.gmra.mrb[6].mxu0 %vm360_vm0, %v2079_v44 }
  0x20   : > { %1631 = vmatprep.mubr.msk.f32.mxu0 %vm360_vm0, %v2082_v46  ;;  %1690 = vmatpush1.bf16.msra.mxu0 %v1689_v34 }
  0x21   : > { %1692 = vmatprep.subr.bf16.mxu0 %v1691_v42  ;;  %1728 = vmatpush1.bf16.msra.mxu1 %v1697_v53 }
  0x22   : > { %1721 = vmatprep.subr.bf16.mxu1 %v1699_v55 }
  0x23   : > { %1632 = vmatmul.mubr.msk.f32.gmra.mrb[8].mxu0 %vm360_vm0, %v2101_v52 }
  0x24   : > { %1634 = vmatprep.mubr.msk.f32.mxu0 %vm360_vm0, %v2104_v54  ;;  %1694 = vmatpush1.bf16.msra.mxu0 %v1693_v45 }
  0x25   : > { %1696 = vmatprep.subr.bf16.mxu0 %v1695_v47  ;;  %1729 = vmatpush1.bf16.msra.mxu1 %v1701_v61 }
  0x26   : > { %1722 = vmatprep.subr.bf16.mxu1 %v1703_v63 }
  0x27   : > { %1635 = vmatmul.mubr.msk.f32.gmra.mrb[10].mxu0 %vm360_vm0, %v2123_v60 }
  0x28   : > { %1637 = vmatprep.mubr.msk.f32.mxu0 %vm360_vm0, %v2126_v62  ;;  %1698 = vmatpush1.bf16.msra.mxu0 %v1697_v53 }
  0x29   : > { %1700 = vmatprep.subr.bf16.mxu0 %v1699_v55  ;;  %1730 = vmatpush1.bf16.msra.mxu1 %v1705_v3 }
  0x2a   : > { %1708 = vmatprep.subr.bf16.mxu1 %v1707_v28 }
  0x2b   : > { %1638 = vmatmul.mubr.msk.f32.gmra.mrb[12].mxu0 %vm360_vm0, %v2139_v2 }
  0x2c   : > { %1640 = vmatprep.mubr.msk.f32.mxu0 %vm360_vm0, %v2142_v4  ;;  %1702 = vmatpush1.bf16.msra.mxu0 %v1701_v61 }
  0x2d   : > { %1704 = vmatprep.subr.bf16.mxu0 %v1703_v63  ;;  %v348_v63 = vld [vmem:[%s2718_s1] sm:$0xff] }
  0x2e   : > { %v1709_v28 = vpack.c.bf16 %v350_v0, %v348_v63 }
  0x2f   : > { %1641 = vmatmul.mubr.msk.f32.gmra.mrb[14].mxu0 %vm360_vm0, %v2149_v5 }
  0x30   : > { %1643 = vmatprep.mubr.msk.f32.mxu0 %vm360_vm0, %v2152_v6  ;;  %1706 = vmatpush1.bf16.msra.mxu0 %v1705_v3 }
  0x33   : > { %1644 = vmatmul.mubr.msk.f32.gmra.mrb[16].mxu0 %vm360_vm0, %v2159_v7 }
  0x34   : > { %1646 = vmatprep.mubr.msk.f32.mxu0 %vm360_vm0, %v2162_v8 }
  0x37   : > { %1647 = vmatmul.mubr.msk.f32.gmra.mrb[18].mxu0 %vm360_vm0, %v2169_v9 }
  0x38   : > { %1649 = vmatprep.mubr.msk.f32.mxu0 %vm360_vm0, %v2172_v10 }
  0x3b   : > { %1650 = vmatmul.mubr.msk.f32.gmra.mrb[20].mxu0 %vm360_vm0, %v2179_v11 }
  0x3c   : > { %1652 = vmatprep.mubr.msk.f32.mxu0 %vm360_vm0, %v2182_v12 }
  0x3f   : > { %1653 = vmatmul.mubr.msk.f32.gmra.mrb[22].mxu0 %vm360_vm0, %v2189_v13 }
  0x40   : > { %1655 = vmatprep.mubr.msk.f32.mxu0 %vm360_vm0, %v2192_v14 }
  0x43   : > { %1656 = vmatmul.mubr.msk.f32.gmra.mrb[24].mxu0 %vm360_vm0, %v2199_v15 }
  0x44   : > { %1658 = vmatprep.mubr.msk.f32.mxu0 %vm360_vm0, %v2202_v16 }
  0x47   : > { %1659 = vmatmul.mubr.msk.f32.gmra.mrb[26].mxu0 %vm360_vm0, %v2209_v17 }
  0x48   : > { %1661 = vmatprep.mubr.msk.f32.mxu0 %vm360_vm0, %v2212_v18 }
  0x4b   : > { %1662 = vmatmul.mubr.msk.f32.gmra.mrb[28].mxu0 %vm360_vm0, %v2219_v20 }
  0x4c   : > { %1664 = vmatprep.mubr.msk.f32.mxu0 %vm360_vm0, %v2222_v22 }
  0x4f   : > { %1665 = vmatmul.mubr.msk.f32.gmra.mrb[30].mxu0 %vm360_vm0, %v2229_v23 }
  0x50   : > { %778 = vmatprep.mubr.f32.mxu0 %v1908_v24 }
  0xe6   : > { %v1621_v30 = vpop.f32.mrb[0].mxu0 }
  0xe7   : > { %v523_v31 = vpop.f32.mrb[1].mxu0 }
  0xe8   : > { %779 = vmatmul.mubr.f32.vlgmr.msra.gmra.mrb[32].mxu0 %v523_v31  ;;  %v1711_v31 = vpack.c.bf16 %v355_v27, %v353_v26 }
  0xe9   : > { %784 = vmatprep.mubr.f32.mxu0 %v1908_v24 }
  0xea   : > { %v1624_v32 = vpop.f32.mrb[2].mxu0 }
  0xeb   : > { %v533_v34 = vpop.f32.mrb[3].mxu0 }
  0xec   : > { %785 = vmatmul.mubr.f32.gmra.mrb[34].mxu0 %v1621_v30 }
  0xed   : > { %790 = vmatprep.mubr.f32.mxu0 %v1908_v24 }
  0xee   : > { %v1627_v36 = vpop.f32.mrb[4].mxu0 }
  0xef   : > { %v543_v38 = vpop.f32.mrb[5].mxu0 }
  0xf0   : > { %791 = vmatmul.mubr.f32.gmra.mrb[36].mxu0 %v533_v34  ;;  %v352_v34 = vld [vmem:[%s2718_s1 + $0x20] sm:$0xff] }
  0xf1   : > { %796 = vmatprep.mubr.f32.mxu0 %v1908_v24 }
  0xf2   : > { %v1630_v39 = vpop.f32.mrb[6].mxu0 }
  0xf3   : > { %v553_v40 = vpop.f32.mrb[7].mxu0 }
  0xf4   : > { %797 = vmatmul.mubr.f32.gmra.mrb[38].mxu0 %v1624_v32 }
  0xf5   : > { %802 = vmatprep.mubr.f32.mxu0 %v1908_v24 }
  0xf6   : > { %v1633_v41 = vpop.f32.mrb[8].mxu0 }
  0xf7   : > { %v563_v42 = vpop.f32.mrb[9].mxu0 }
  0xf8   : > { %803 = vmatmul.mubr.f32.gmra.mrb[40].mxu0 %v543_v38 }
  0xf9   : > { %808 = vmatprep.mubr.f32.mxu0 %v1908_v24 }
  0xfa   : > { %v1636_v43 = vpop.f32.mrb[10].mxu0 }
  0xfb   : > { %v573_v45 = vpop.f32.mrb[11].mxu0 }
  0xfc   : > { %809 = vmatmul.mubr.f32.gmra.mrb[42].mxu0 %v1627_v36  ;;  %v354_v36 = vld [vmem:[%s2718_s1 + $0x30] sm:$0xff] }
  0xfd   : > { %814 = vmatprep.mubr.f32.mxu0 %v1908_v24 }
  0xfe   : > { %v1639_v47 = vpop.f32.mrb[12].mxu0 }
  0xff   : > { %v583_v48 = vpop.f32.mrb[13].mxu0 }
 0x100   : > { %815 = vmatmul.mubr.f32.gmra.mrb[44].mxu0 %v553_v40 }
 0x101   : > { %820 = vmatprep.mubr.f32.mxu0 %v1908_v24 }
 0x102   : > { %v1642_v49 = vpop.f32.mrb[14].mxu0 }
 0x103   : > { %v593_v50 = vpop.f32.mrb[15].mxu0 }
 0x104   : > { %821 = vmatmul.mubr.f32.gmra.mrb[46].mxu0 %v1630_v39  ;;  %v1713_v39 = vpack.c.bf16 %v354_v36, %v352_v34 }
 0x105   : > { %826 = vmatprep.mubr.f32.mxu0 %v1908_v24 }
 0x106   : > { %v1645_v51 = vpop.f32.mrb[16].mxu0 }
 0x107   : > { %v603_v53 = vpop.f32.mrb[17].mxu0 }
 0x108   : > { %827 = vmatmul.mubr.f32.gmra.mrb[48].mxu0 %v563_v42 }
 0x109   : > { %832 = vmatprep.mubr.f32.mxu0 %v1908_v24 }
 0x10a   : > { %v1648_v55 = vpop.f32.mrb[18].mxu0 }
 0x10b   : > { %v613_v56 = vpop.f32.mrb[19].mxu0 }
 0x10c   : > { %833 = vmatmul.mubr.f32.gmra.mrb[50].mxu0 %v1633_v41 }
 0x10d   : > { %838 = vmatprep.mubr.f32.mxu0 %v1908_v24 }
 0x10e   : > { %v1651_v57 = vpop.f32.mrb[20].mxu0 }
 0x10f   : > { %v623_v58 = vpop.f32.mrb[21].mxu0 }
 0x110   : > { %839 = vmatmul.mubr.f32.gmra.mrb[52].mxu0 %v573_v45 }
 0x111   : > { %844 = vmatprep.mubr.f32.mxu0 %v1908_v24 }
 0x112   : > { %v2252_v59 = vpop.f32.mrb[22].mxu0 }
 0x113   : > { %v633_v61 = vpop.f32.mrb[23].mxu0 }
 0x114   : > { %845 = vmatmul.mubr.f32.gmra.mrb[54].mxu0 %v1636_v43 }
 0x115   : > { %850 = vmatprep.mubr.f32.mxu0 %v1908_v24 }
 0x116   : > { %v2261_v1 = vpop.f32.mrb[24].mxu0 }
 0x117   : > { %v643_v3 = vpop.f32.mrb[25].mxu0 }
 0x118   : > { %851 = vmatmul.mubr.f32.gmra.mrb[56].mxu0 %v583_v48 }
 0x119   : > { %856 = vmatprep.mubr.f32.mxu0 %v1908_v24 }
 0x11a   : > { %v1660_v30 = vpop.f32.mrb[26].mxu0 }
 0x11b   : > { %v653_v32 = vpop.f32.mrb[27].mxu0  ;;  %941 = vmatmul.mubr.f32.vlgmr.msra.gmra.mrb[0].mxu1 %v1660_v30 }
 0x11c   : > { %857 = vmatmul.mubr.f32.gmra.mrb[58].mxu0 %v1639_v47  ;;  %1710 = vmatpush1.bf16.msra.mxu1 %v1709_v28  ;;  %v971_v47 = vld [vmem:[%s2719_s2] sm:$0x3] }
 0x11d   : > { %862 = vmatprep.mubr.f32.mxu0 %v1908_v24  ;;  %946 = vmatprep.mubr.f32.mxu1 %v1908_v24 }
 0x11e   : > { %v1663_v38 = vpop.f32.mrb[28].mxu0  ;;  %1712 = vmatprep.subr.bf16.mxu1 %v1711_v31 }
 0x11f   : > { %v663_v40 = vpop.f32.mrb[29].mxu0 }
 0x120   : > { %863 = vmatmul.mubr.f32.gmra.mrb[60].mxu0 %v593_v50  ;;  %947 = vmatmul.mubr.f32.gmra.mrb[2].mxu1 %v663_v40 }
 0x121   : > { %868 = vmatprep.mubr.f32.mxu0 %v1908_v24  ;;  %952 = vmatprep.mubr.f32.mxu1 %v1908_v24 }
 0x122   : > { %v1666_v41 = vpop.f32.mrb[30].mxu0  ;;  %1714 = vmatpush1.bf16.msra.mxu1 %v1713_v39 }
 0x123   : > { %v673_v42 = vpop.f32.mrb[31].mxu0 }
 0x124   : > { %869 = vmatmul.mubr.f32.gmra.mrb[62].mxu0 %v1642_v49  ;;  %953 = vmatmul.mubr.f32.gmra.mrb[4].mxu1 %v1663_v38 }
 0x125   : > { %874 = vmatprep.mubr.f32.mxu0 %v1908_v24  ;;  %958 = vmatprep.mubr.f32.mxu1 %v1908_v24 }
 0x128   : > { %875 = vmatmul.mubr.f32.gmra.mrb[64].mxu0 %v603_v53  ;;  %959 = vmatmul.mubr.f32.gmra.mrb[6].mxu1 %v673_v42 }
 0x129   : > { %880 = vmatprep.mubr.f32.mxu0 %v1908_v24  ;;  %964 = vmatprep.mubr.f32.mxu1 %v1908_v24 }
 0x12c   : > { %881 = vmatmul.mubr.f32.gmra.mrb[66].mxu0 %v1645_v51  ;;  %965 = vmatmul.mubr.f32.gmra.mrb[8].mxu1 %v1666_v41 }
 0x12d   : > { %886 = vmatprep.mubr.f32.mxu0 %v1908_v24  ;;  %1047 = vmatprep.mubr.f32.mxu1 %v1908_v24 }
 0x130   : > { %887 = vmatmul.mubr.f32.gmra.mrb[68].mxu0 %v613_v56  ;;  %1540 = vmatmul.mubr.msk.f32.vlgmr.msra.gmra.mrb[10].mxu1 %vm360_vm0, %v2008_v19 }
 0x131   : > { %892 = vmatprep.mubr.f32.mxu0 %v1908_v24  ;;  %1053 = vmatprep.mubr.f32.mxu1 %v1908_v24 }
 0x134   : > { %893 = vmatmul.mubr.f32.gmra.mrb[70].mxu0 %v1648_v55  ;;  %1541 = vmatmul.mubr.msk.f32.gmra.mrb[12].mxu1 %vm360_vm0, %v2013_v21 }
 0x135   : > { %898 = vmatprep.mubr.f32.mxu0 %v1908_v24  ;;  %1059 = vmatprep.mubr.f32.mxu1 %v1908_v24 }
 0x138   : > { %899 = vmatmul.mubr.f32.gmra.mrb[72].mxu0 %v623_v58  ;;  %1542 = vmatmul.mubr.msk.f32.gmra.mrb[14].mxu1 %vm360_vm0, %v2022_v25 }
 0x139   : > { %904 = vmatprep.mubr.f32.mxu0 %v1908_v24  ;;  %1065 = vmatprep.mubr.f32.mxu1 %v1908_v24 }
 0x13c   : > { %905 = vmatmul.mubr.f32.gmra.mrb[74].mxu0 %v1651_v57  ;;  %1543 = vmatmul.mubr.msk.f32.gmra.mrb[16].mxu1 %vm360_vm0, %v2035_v29 }
 0x13d   : > { %910 = vmatprep.mubr.f32.mxu0 %v1908_v24  ;;  %1071 = vmatprep.mubr.f32.mxu1 %v1908_v24 }
 0x140   : > { %911 = vmatmul.mubr.f32.gmra.mrb[76].mxu0 %v633_v61  ;;  %1544 = vmatmul.mubr.msk.f32.gmra.mrb[18].mxu1 %vm360_vm0, %v2044_v33 }
 0x141   : > { %916 = vmatprep.mubr.f32.mxu0 %v1908_v24  ;;  %1077 = vmatprep.mubr.f32.mxu1 %v1908_v24 }
 0x144   : > { %917 = vmatmul.mubr.f32.gmra.mrb[78].mxu0 %v2252_v59  ;;  %1545 = vmatmul.mubr.msk.f32.gmra.mrb[20].mxu1 %vm360_vm0, %v2051_v35 }
 0x145   : > { %922 = vmatprep.mubr.f32.mxu0 %v1908_v24  ;;  %1083 = vmatprep.mubr.f32.mxu1 %v1908_v24 }
 0x148   : > { %923 = vmatmul.mubr.f32.gmra.mrb[80].mxu0 %v643_v3  ;;  %1546 = vmatmul.mubr.msk.f32.gmra.mrb[22].mxu1 %vm360_vm0, %v2057_v37 }
 0x149   : > { %928 = vmatprep.mubr.f32.mxu0 %v1908_v24  ;;  %1089 = vmatprep.mubr.f32.mxu1 %v1908_v24 }
 0x14c   : > { %929 = vmatmul.mubr.f32.gmra.mrb[82].mxu0 %v2261_v1  ;;  %1547 = vmatmul.mubr.msk.f32.gmra.mrb[24].mxu1 %vm360_vm0, %v2079_v44 }
 0x14d   : > { %934 = vmatprep.mubr.f32.mxu0 %v1908_v24  ;;  %1095 = vmatprep.mubr.f32.mxu1 %v1908_v24 }
 0x150   : > { %935 = vmatmul.mubr.f32.gmra.mrb[84].mxu0 %v653_v32  ;;  %1548 = vmatmul.mubr.msk.f32.gmra.mrb[26].mxu1 %vm360_vm0, %v2082_v46 }
 0x151   : > { %1101 = vmatprep.mubr.f32.mxu1 %v1908_v24 }
 0x154   : > { %1549 = vmatmul.mubr.msk.f32.gmra.mrb[28].mxu1 %vm360_vm0, %v2101_v52 }
 0x155   : > { %1107 = vmatprep.mubr.f32.mxu1 %v1908_v24 }
 0x158   : > { %1550 = vmatmul.mubr.msk.f32.gmra.mrb[30].mxu1 %vm360_vm0, %v2104_v54 }
 0x159   : > { %1113 = vmatprep.mubr.f32.mxu1 %v1908_v24 }
 0x15c   : > { %1551 = vmatmul.mubr.msk.f32.gmra.mrb[32].mxu1 %vm360_vm0, %v2123_v60 }
 0x15d   : > { %1119 = vmatprep.mubr.f32.mxu1 %v1908_v24 }
 0x160   : > { %1552 = vmatmul.mubr.msk.f32.gmra.mrb[34].mxu1 %vm360_vm0, %v2126_v62 }
 0x161   : > { %1125 = vmatprep.mubr.f32.mxu1 %v1908_v24 }
 0x164   : > { %1553 = vmatmul.mubr.msk.f32.gmra.mrb[36].mxu1 %vm360_vm0, %v2139_v2 }
 0x165   : > { %1131 = vmatprep.mubr.f32.mxu1 %v1908_v24 }
 0x168   : > { %1554 = vmatmul.mubr.msk.f32.gmra.mrb[38].mxu1 %vm360_vm0, %v2142_v4 }
 0x169   : > { %1137 = vmatprep.mubr.f32.mxu1 %v1908_v24 }
 0x16c   : > { %1555 = vmatmul.mubr.msk.f32.gmra.mrb[40].mxu1 %vm360_vm0, %v2149_v5 }
 0x16d   : > { %1143 = vmatprep.mubr.f32.mxu1 %v1908_v24 }
 0x170   : > { %1556 = vmatmul.mubr.msk.f32.gmra.mrb[42].mxu1 %vm360_vm0, %v2152_v6 }
 0x171   : > { %1149 = vmatprep.mubr.f32.mxu1 %v1908_v24 }
 0x174   : > { %1557 = vmatmul.mubr.msk.f32.gmra.mrb[44].mxu1 %vm360_vm0, %v2159_v7 }
 0x175   : > { %1155 = vmatprep.mubr.f32.mxu1 %v1908_v24 }
 0x178   : > { %1558 = vmatmul.mubr.msk.f32.gmra.mrb[46].mxu1 %vm360_vm0, %v2162_v8 }
 0x179   : > { %1161 = vmatprep.mubr.f32.mxu1 %v1908_v24 }
 0x17c   : > { %1559 = vmatmul.mubr.msk.f32.gmra.mrb[48].mxu1 %vm360_vm0, %v2169_v9 }
 0x17d   : > { %1167 = vmatprep.mubr.f32.mxu1 %v1908_v24 }
 0x180   : > { %1560 = vmatmul.mubr.msk.f32.gmra.mrb[50].mxu1 %vm360_vm0, %v2172_v10 }
 0x181   : > { %1173 = vmatprep.mubr.f32.mxu1 %v1908_v24 }
 0x184   : > { %1561 = vmatmul.mubr.msk.f32.gmra.mrb[52].mxu1 %vm360_vm0, %v2179_v11 }
 0x185   : > { %1179 = vmatprep.mubr.f32.mxu1 %v1908_v24 }
 0x188   : > { %1562 = vmatmul.mubr.msk.f32.gmra.mrb[54].mxu1 %vm360_vm0, %v2182_v12 }
 0x189   : > { %1185 = vmatprep.mubr.f32.mxu1 %v1908_v24 }
 0x18c   : > { %1563 = vmatmul.mubr.msk.f32.gmra.mrb[56].mxu1 %vm360_vm0, %v2189_v13 }
 0x18d   : > { %1191 = vmatprep.mubr.f32.mxu1 %v1908_v24 }
 0x190   : > { %1564 = vmatmul.mubr.msk.f32.gmra.mrb[58].mxu1 %vm360_vm0, %v2192_v14 }
 0x191   : > { %1197 = vmatprep.mubr.f32.mxu1 %v1908_v24 }
 0x194   : > { %1565 = vmatmul.mubr.msk.f32.gmra.mrb[60].mxu1 %vm360_vm0, %v2199_v15 }
 0x195   : > { %1203 = vmatprep.mubr.f32.mxu1 %v1908_v24 }
 0x198   : > { %1566 = vmatmul.mubr.msk.f32.gmra.mrb[62].mxu1 %vm360_vm0, %v2202_v16 }
 0x199   : > { %1209 = vmatprep.mubr.f32.mxu1 %v1908_v24 }
 0x19c   : > { %1567 = vmatmul.mubr.msk.f32.gmra.mrb[0].mxu1 %vm360_vm0, %v2209_v17 }
 0x19d   : > { %1215 = vmatprep.mubr.f32.mxu1 %v1908_v24 }
 0x1a0   : > { %1568 = vmatmul.mubr.msk.f32.gmra.mrb[2].mxu1 %vm360_vm0, %v2212_v18  ;;  %v973_v18 = vlaneseq }
 0x1a1   : > { %1221 = vmatprep.mubr.f32.mxu1 %v1908_v24 }
 0x1a4   : > { %1569 = vmatmul.mubr.msk.f32.gmra.mrb[4].mxu1 %vm360_vm0, %v2219_v20 }
 0x1a5   : > { %1227 = vmatprep.mubr.f32.mxu1 %v1908_v24 }
 0x1a8   : > { %1570 = vmatmul.mubr.msk.f32.gmra.mrb[6].mxu1 %vm360_vm0, %v2222_v22 }
 0x1a9   : > { %1233 = vmatprep.mubr.f32.mxu1 %v1908_v24 }
 0x1ac   : > { %1571 = vmatmul.mubr.msk.f32.gmra.mrb[8].mxu1 %vm360_vm0, %v2229_v23  ;;  %v974_v23 = vshrl.u32 %v973_v18, 7 }
 0x1ae   : > { %v975_v45 = vsub.s32 0, %v974_v23  ;;  %v979_v48 = vsub.s32 1, %v974_v23 }
 0x1b0   : > { %v2450_v51 = vrot.slane %v971_v47, %v975_v45  ;;  %v2452_v53 = vrot.slane %v971_v47, %v979_v48 }
 0x1bb   : > { %v780_v19 = vpop.f32.mrb[32].mxu0 }
 0x1bc   : > { %v782_v21 = vpop.f32.mrb[33].mxu0  ;;  %v1731_v57 = vadd.f32 %v2450_v51, %v780_v19 }
 0x1bd   : > { %v1733_v58 = vadd.f32 %v2452_v53, %v782_v21 }
 0x1bf   : > { %v786_v25 = vpop.f32.mrb[34].mxu0 }
 0x1c0   : > { %v788_v29 = vpop.f32.mrb[35].mxu0  ;;  %v1735_v26 = vadd.f32 %v2450_v51, %v786_v25 }
 0x1c1   : > { %v1737_v27 = vadd.f32 %v2452_v53, %v788_v29 }
 0x1c3   : > { %v792_v33 = vpop.f32.mrb[36].mxu0 }
 0x1c4   : > { %v794_v35 = vpop.f32.mrb[37].mxu0  ;;  %v1739_v38 = vadd.f32 %v2450_v51, %v792_v33 }
 0x1c5   : > { %v1741_v39 = vadd.f32 %v2452_v53, %v794_v35 }
 0x1c7   : > { %v2391_v37 = vpop.f32.mrb[38].mxu0 }
 0x1c8   : > { %v2393_v44 = vpop.f32.mrb[39].mxu0  ;;  %v1743_v29 = vadd.f32 %v2450_v51, %v2391_v37 }
 0x1c9   : > { %v1745_v33 = vadd.f32 %v2452_v53, %v2393_v44 }
 0x1cb   : > { %v2395_v46 = vpop.f32.mrb[40].mxu0 }
 0x1cc   : > { %v2397_v52 = vpop.f32.mrb[41].mxu0 }
 0x1cd   : > { %v1749_v37 = vadd.f32 %v2452_v53, %v2397_v52 }
 0x1cf   : > { %v2399_v54 = vpop.f32.mrb[42].mxu0 }
 0x1d0   : > { %v2401_v60 = vpop.f32.mrb[43].mxu0 }
 0x1d3   : > { %v2403_v62 = vpop.f32.mrb[44].mxu0 }
 0x1d4   : > { %v2405_v2 = vpop.f32.mrb[45].mxu0 }
 0x1d7   : > { %v2407_v4 = vpop.f32.mrb[46].mxu0 }
 0x1d8   : > { %v2409_v5 = vpop.f32.mrb[47].mxu0 }
 0x1db   : > { %v2411_v6 = vpop.f32.mrb[48].mxu0 }
 0x1dc   : > { %v2413_v7 = vpop.f32.mrb[49].mxu0 }
 0x1df   : > { %v2415_v8 = vpop.f32.mrb[50].mxu0 }
 0x1e0   : > { %v2417_v9 = vpop.f32.mrb[51].mxu0 }
 0x1e3   : > { %v2419_v10 = vpop.f32.mrb[52].mxu0 }
 0x1e4   : > { %v2421_v11 = vpop.f32.mrb[53].mxu0 }
 0x1e7   : > { %v2423_v12 = vpop.f32.mrb[54].mxu0 }
 0x1e8   : > { %v2425_v13 = vpop.f32.mrb[55].mxu0 }
 0x1eb   : > { %v2427_v14 = vpop.f32.mrb[56].mxu0 }
 0x1ec   : > { %v2429_v15 = vpop.f32.mrb[57].mxu0 }
 0x1ef   : > { %v2431_v16 = vpop.f32.mrb[58].mxu0 }
 0x1f0   : > { %v2433_v17 = vpop.f32.mrb[59].mxu0 }
 0x1f3   : > { %v2435_v20 = vpop.f32.mrb[60].mxu0 }
 0x1f4   : > { %v2437_v22 = vpop.f32.mrb[61].mxu0 }
 0x1f7   : > { %v2439_v24 = vpop.f32.mrb[62].mxu0 }
 0x1f8   : > { %v2441_v43 = vpop.f32.mrb[63].mxu0 }
 0x1fb   : > { %v2446_v49 = vpop.f32.mrb[64].mxu0 }
 0x1fc   : > { %v2448_v50 = vpop.f32.mrb[65].mxu0 }
 0x1ff   : > { %v2454_v55 = vpop.f32.mrb[66].mxu0 }
 0x200   : > { %v2456_v56 = vpop.f32.mrb[67].mxu0 }
 0x203   : > { %v2461_v59 = vpop.f32.mrb[68].mxu0  ;;  %v1049_v61 = vpop.f32.mrb[10].mxu1 }
 0x204   : > { %v1732_v63 = vadd.f32 %v1731_v57, %v1049_v61  ;;  %v2468_v0 = vpop.f32.mrb[69].mxu0  ;;  %v1051_v1 = vpop.f32.mrb[11].mxu1  ;;  %v1747_v57 = vadd.f32 %v2450_v51, %v2395_v46  ;;  %v1753_v46 = vadd.f32 %v2452_v53, %v2401_v60 }
 0x205   : > { %v1734_v3 = vadd.f32 %v1733_v58, %v1051_v1 }
 0x206   : > { %1304 = vst [vmem:[%s2466_s13] sm:$0xff] %v1732_v63 }
 0x207   : > { %1306 = vst.msk [vmem:[%s2466_s13 + $0x8] sm:$0xff] %vm1305_vm1, %v1734_v3  ;;  %v2475_v28 = vpop.f32.mrb[70].mxu0  ;;  %v1055_v30 = vpop.f32.mrb[12].mxu1 }
 0x208   : > { %v1736_v31 = vadd.f32 %v1735_v26, %v1055_v30  ;;  %v2477_v32 = vpop.f32.mrb[71].mxu0  ;;  %v1057_v34 = vpop.f32.mrb[13].mxu1  ;;  %v1751_v26 = vadd.f32 %v2450_v51, %v2399_v54  ;;  %v1757_v54 = vadd.f32 %v2452_v53, %v2405_v2 }
 0x209   : > { %v1738_v36 = vadd.f32 %v1737_v27, %v1057_v34 }
 0x20a   : > { %1307 = vst [vmem:[%s2466_s13 + $0x10] sm:$0xff] %v1736_v31 }
 0x20b   : > { %1308 = vst.msk [vmem:[%s2466_s13 + $0x18] sm:$0xff] %vm1305_vm1, %v1738_v36  ;;  %v2484_v40 = vpop.f32.mrb[72].mxu0  ;;  %v1061_v41 = vpop.f32.mrb[14].mxu1 }
 0x20c   : > { %v1740_v42 = vadd.f32 %v1739_v38, %v1061_v41  ;;  %v2486_v19 = vpop.f32.mrb[73].mxu0  ;;  %v1063_v21 = vpop.f32.mrb[15].mxu1  ;;  %v1755_v38 = vadd.f32 %v2450_v51, %v2403_v62  ;;  %v1761_v62 = vadd.f32 %v2452_v53, %v2409_v5 }
 0x20d   : > { %v1742_v25 = vadd.f32 %v1741_v39, %v1063_v21 }
 0x20e   : > { %1309 = vst [vmem:[%s2466_s13 + $0x20] sm:$0xff] %v1740_v42 }
 0x20f   : > { %1310 = vst.msk [vmem:[%s2466_s13 + $0x28] sm:$0xff] %vm1305_vm1, %v1742_v25  ;;  %v2495_v35 = vpop.f32.mrb[74].mxu0  ;;  %v1067_v18 = vpop.f32.mrb[16].mxu1 }
 0x210   : > { %v1744_v23 = vadd.f32 %v1743_v29, %v1067_v18  ;;  %v2497_v45 = vpop.f32.mrb[75].mxu0  ;;  %v1069_v47 = vpop.f32.mrb[17].mxu1  ;;  %v1759_v29 = vadd.f32 %v2450_v51, %v2407_v4  ;;  %v1765_v4 = vadd.f32 %v2452_v53, %v2413_v7 }
 0x211   : > { %v1746_v48 = vadd.f32 %v1745_v33, %v1069_v47 }
 0x212   : > { %1311 = vst [vmem:[%s2466_s13 + $0x30] sm:$0xff] %v1744_v23 }
 0x213   : > { %1312 = vst.msk [vmem:[%s2466_s13 + $0x38] sm:$0xff] %vm1305_vm1, %v1746_v48  ;;  %v2506_v44 = vpop.f32.mrb[76].mxu0  ;;  %v1073_v58 = vpop.f32.mrb[18].mxu1 }
 0x214   : > { %v1748_v61 = vadd.f32 %v1747_v57, %v1073_v58  ;;  %v2508_v63 = vpop.f32.mrb[77].mxu0  ;;  %v1075_v1 = vpop.f32.mrb[19].mxu1  ;;  %v1763_v57 = vadd.f32 %v2450_v51, %v2411_v6  ;;  %v1769_v6 = vadd.f32 %v2452_v53, %v2417_v9 }
 0x215   : > { %v1750_v3 = vadd.f32 %v1749_v37, %v1075_v1 }
 0x216   : > { %1313 = vst [vmem:[%s2466_s13 + $0x40] sm:$0xff] %v1748_v61 }
 0x217   : > { %1314 = vst.msk [vmem:[%s2466_s13 + $0x48] sm:$0xff] %vm1305_vm1, %v1750_v3  ;;  %v2517_v52 = vpop.f32.mrb[78].mxu0  ;;  %v1079_v27 = vpop.f32.mrb[20].mxu1 }
 0x218   : > { %v1752_v30 = vadd.f32 %v1751_v26, %v1079_v27  ;;  %v2519_v31 = vpop.f32.mrb[79].mxu0  ;;  %v1081_v34 = vpop.f32.mrb[21].mxu1  ;;  %v1767_v26 = vadd.f32 %v2450_v51, %v2415_v8  ;;  %v1773_v8 = vadd.f32 %v2452_v53, %v2421_v11 }
 0x219   : > { %v1754_v36 = vadd.f32 %v1753_v46, %v1081_v34  ;;  %v1771_v34 = vadd.f32 %v2450_v51, %v2419_v10  ;;  %v1777_v10 = vadd.f32 %v2452_v53, %v2425_v13 }
 0x21a   : > { %1315 = vst [vmem:[%s2466_s13 + $0x50] sm:$0xff] %v1752_v30 }
 0x21b   : > { %1316 = vst.msk [vmem:[%s2466_s13 + $0x58] sm:$0xff] %vm1305_vm1, %v1754_v36  ;;  %v2528_v60 = vpop.f32.mrb[80].mxu0  ;;  %v1085_v39 = vpop.f32.mrb[22].mxu1 }
 0x21c   : > { %v1756_v41 = vadd.f32 %v1755_v38, %v1085_v39  ;;  %v2530_v42 = vpop.f32.mrb[81].mxu0  ;;  %v1087_v21 = vpop.f32.mrb[23].mxu1  ;;  %v1775_v39 = vadd.f32 %v2450_v51, %v2423_v12  ;;  %v1781_v12 = vadd.f32 %v2452_v53, %v2429_v15 }
 0x21d   : > { %v1758_v25 = vadd.f32 %v1757_v54, %v1087_v21 }
 0x21e   : > { %1317 = vst [vmem:[%s2466_s13 + $0x60] sm:$0xff] %v1756_v41 }
 0x21f   : > { %1318 = vst.msk [vmem:[%s2466_s13 + $0x68] sm:$0xff] %vm1305_vm1, %v1758_v25  ;;  %v2539_v2 = vpop.f32.mrb[82].mxu0  ;;  %v1091_v33 = vpop.f32.mrb[24].mxu1 }
 0x220   : > { %v1760_v18 = vadd.f32 %v1759_v29, %v1091_v33  ;;  %v2541_v23 = vpop.f32.mrb[83].mxu0  ;;  %v1093_v47 = vpop.f32.mrb[25].mxu1  ;;  %v1779_v29 = vadd.f32 %v2450_v51, %v2427_v14  ;;  %v1785_v14 = vadd.f32 %v2452_v53, %v2433_v17 }
 0x221   : > { %v1762_v48 = vadd.f32 %v1761_v62, %v1093_v47  ;;  %v1783_v47 = vadd.f32 %v2450_v51, %v2431_v16  ;;  %v1789_v16 = vadd.f32 %v2452_v53, %v2437_v22 }
 0x222   : > { %1319 = vst [vmem:[%s2466_s13 + $0x70] sm:$0xff] %v1760_v18 }
 0x223   : > { %1320 = vst.msk [vmem:[%s2466_s13 + $0x78] sm:$0xff] %vm1305_vm1, %v1762_v48  ;;  %v2550_v5 = vpop.f32.mrb[84].mxu0  ;;  %v1097_v37 = vpop.f32.mrb[26].mxu1 }
 0x224   : > { %v1764_v58 = vadd.f32 %v1763_v57, %v1097_v37  ;;  %v2552_v61 = vpop.f32.mrb[85].mxu0  ;;  %v1099_v1 = vpop.f32.mrb[27].mxu1  ;;  %v1787_v37 = vadd.f32 %v2450_v51, %v2435_v20  ;;  %v1793_v20 = vadd.f32 %v2452_v53, %v2441_v43 }
 0x225   : > { %v1766_v3 = vadd.f32 %v1765_v4, %v1099_v1 }
 0x226   : > { %1321 = vst [vmem:[%s2466_s13 + $0x80] sm:$0xff] %v1764_v58 }
 0x227   : > { %1322 = vst.msk [vmem:[%s2466_s13 + $0x88] sm:$0xff] %vm1305_vm1, %v1766_v3  ;;  %v1103_v7 = vpop.f32.mrb[28].mxu1 }
 0x228   : > { %v1768_v46 = vadd.f32 %v1767_v26, %v1103_v7  ;;  %v1105_v27 = vpop.f32.mrb[29].mxu1  ;;  %v1791_v26 = vadd.f32 %v2450_v51, %v2439_v24  ;;  %v1797_v24 = vadd.f32 %v2452_v53, %v2448_v50 }
 0x229   : > { %v1770_v30 = vadd.f32 %v1769_v6, %v1105_v27  ;;  %v1795_v27 = vadd.f32 %v2450_v51, %v2446_v49  ;;  %v1801_v49 = vadd.f32 %v2452_v53, %v2456_v56 }
 0x22a   : > { %1323 = vst [vmem:[%s2466_s13 + $0x90] sm:$0xff] %v1768_v46 }
 0x22b   : > { %1324 = vst.msk [vmem:[%s2466_s13 + $0x98] sm:$0xff] %vm1305_vm1, %v1770_v30  ;;  %v1109_v36 = vpop.f32.mrb[30].mxu1 }
 0x22c   : > { %v1772_v9 = vadd.f32 %v1771_v34, %v1109_v36  ;;  %v1111_v38 = vpop.f32.mrb[31].mxu1  ;;  %v1799_v36 = vadd.f32 %v2450_v51, %v2454_v55  ;;  %v1805_v55 = vadd.f32 %v2452_v53, %v2468_v0 }
 0x22d   : > { %v1774_v54 = vadd.f32 %v1773_v8, %v1111_v38 }
 0x22e   : > { %1325 = vst [vmem:[%s2466_s13 + $0xa0] sm:$0xff] %v1772_v9 }
 0x22f   : > { %1326 = vst.msk [vmem:[%s2466_s13 + $0xa8] sm:$0xff] %vm1305_vm1, %v1774_v54  ;;  %v1115_v41 = vpop.f32.mrb[32].mxu1 }
 0x230   : > { %v1776_v11 = vadd.f32 %v1775_v39, %v1115_v41  ;;  %v1117_v21 = vpop.f32.mrb[33].mxu1  ;;  %v1803_v39 = vadd.f32 %v2450_v51, %v2461_v59  ;;  %v1809_v59 = vadd.f32 %v2452_v53, %v2477_v32 }
 0x231   : > { %v1778_v25 = vadd.f32 %v1777_v10, %v1117_v21  ;;  %v1807_v21 = vadd.f32 %v2450_v51, %v2475_v28  ;;  %v1813_v28 = vadd.f32 %v2452_v53, %v2486_v19 }
 0x232   : > { %1327 = vst [vmem:[%s2466_s13 + $0xb0] sm:$0xff] %v1776_v11 }
 0x233   : > { %1328 = vst.msk [vmem:[%s2466_s13 + $0xb8] sm:$0xff] %vm1305_vm1, %v1778_v25  ;;  %v1121_v62 = vpop.f32.mrb[34].mxu1 }
 0x234   : > { %v1780_v13 = vadd.f32 %v1779_v29, %v1121_v62  ;;  %v1123_v33 = vpop.f32.mrb[35].mxu1  ;;  %v1811_v62 = vadd.f32 %v2450_v51, %v2484_v40  ;;  %v1817_v40 = vadd.f32 %v2452_v53, %v2497_v45 }
 0x235   : > { %v1782_v18 = vadd.f32 %v1781_v12, %v1123_v33 }
 0x236   : > { %1329 = vst [vmem:[%s2466_s13 + $0xc0] sm:$0xff] %v1780_v13 }
 0x237   : > { %1330 = vst.msk [vmem:[%s2466_s13 + $0xc8] sm:$0xff] %vm1305_vm1, %v1782_v18  ;;  %v1127_v48 = vpop.f32.mrb[36].mxu1 }
 0x238   : > { %v1784_v15 = vadd.f32 %v1783_v47, %v1127_v48  ;;  %v1129_v57 = vpop.f32.mrb[37].mxu1  ;;  %v1815_v47 = vadd.f32 %v2450_v51, %v2495_v35  ;;  %v1821_v35 = vadd.f32 %v2452_v53, %v2508_v63 }
 0x239   : > { %v1786_v4 = vadd.f32 %v1785_v14, %v1129_v57  ;;  %v1819_v57 = vadd.f32 %v2450_v51, %v2506_v44  ;;  %v1825_v44 = vadd.f32 %v2452_v53, %v2519_v31 }
 0x23a   : > { %1331 = vst [vmem:[%s2466_s13 + $0xd0] sm:$0xff] %v1784_v15 }
 0x23b   : > { %1332 = vst.msk [vmem:[%s2466_s13 + $0xd8] sm:$0xff] %vm1305_vm1, %v1786_v4  ;;  %v1133_v58 = vpop.f32.mrb[38].mxu1 }
 0x23c   : > { %v1788_v17 = vadd.f32 %v1787_v37, %v1133_v58  ;;  %v1135_v1 = vpop.f32.mrb[39].mxu1  ;;  %v1823_v58 = vadd.f32 %v2450_v51, %v2517_v52  ;;  %v1829_v52 = vadd.f32 %v2452_v53, %v2530_v42 }
 0x23d   : > { %v1790_v3 = vadd.f32 %v1789_v16, %v1135_v1 }
 0x23e   : > { %1333 = vst [vmem:[%s2466_s13 + $0xe0] sm:$0xff] %v1788_v17 }
 0x23f   : > { %1334 = vst.msk [vmem:[%s2466_s13 + $0xe8] sm:$0xff] %vm1305_vm1, %v1790_v3  ;;  %v1139_v6 = vpop.f32.mrb[40].mxu1 }
 0x240   : > { %v1792_v22 = vadd.f32 %v1791_v26, %v1139_v6  ;;  %v1141_v7 = vpop.f32.mrb[41].mxu1  ;;  %v1827_v26 = vadd.f32 %v2450_v51, %v2528_v60  ;;  %v1833_v60 = vadd.f32 %v2452_v53, %v2541_v23 }
 0x241   : > { %v1794_v46 = vadd.f32 %v1793_v20, %v1141_v7  ;;  %v1831_v7 = vadd.f32 %v2450_v51, %v2539_v2  ;;  %v1837_v2 = vadd.f32 %v2452_v53, %v2552_v61 }
 0x242   : > { %1335 = vst [vmem:[%s2466_s13 + $0xf0] sm:$0xff] %v1792_v22 }
 0x243   : > { %1336 = vst.msk [vmem:[%s2466_s13 + $0xf8] sm:$0xff] %vm1305_vm1, %v1794_v46  ;;  %v1145_v30 = vpop.f32.mrb[42].mxu1 }
 0x244   : > { %v1796_v43 = vadd.f32 %v1795_v27, %v1145_v30  ;;  %v1147_v34 = vpop.f32.mrb[43].mxu1  ;;  %v1835_v30 = vadd.f32 %v2450_v51, %v2550_v5 }
 0x245   : > { %v1798_v8 = vadd.f32 %v1797_v24, %v1147_v34 }
 0x246   : > { %1337 = vst [vmem:[%s2466_s13 + $0x100] sm:$0xff] %v1796_v43 }
 0x247   : > { %1338 = vst.msk [vmem:[%s2466_s13 + $0x108] sm:$0xff] %vm1305_vm1, %v1798_v8  ;;  %v1151_v9 = vpop.f32.mrb[44].mxu1 }
 0x248   : > { %v1800_v50 = vadd.f32 %v1799_v36, %v1151_v9  ;;  %v1153_v38 = vpop.f32.mrb[45].mxu1 }
 0x249   : > { %v1802_v54 = vadd.f32 %v1801_v49, %v1153_v38 }
 0x24a   : > { %1339 = vst [vmem:[%s2466_s13 + $0x110] sm:$0xff] %v1800_v50 }
 0x24b   : > { %1340 = vst.msk [vmem:[%s2466_s13 + $0x118] sm:$0xff] %vm1305_vm1, %v1802_v54  ;;  %v1157_v10 = vpop.f32.mrb[46].mxu1 }
 0x24c   : > { %v1804_v56 = vadd.f32 %v1803_v39, %v1157_v10  ;;  %v1159_v41 = vpop.f32.mrb[47].mxu1 }
 0x24d   : > { %v1806_v11 = vadd.f32 %v1805_v55, %v1159_v41 }
 0x24e   : > { %1341 = vst [vmem:[%s2466_s13 + $0x120] sm:$0xff] %v1804_v56 }
 0x24f   : > { %1342 = vst.msk [vmem:[%s2466_s13 + $0x128] sm:$0xff] %vm1305_vm1, %v1806_v11  ;;  %v1163_v25 = vpop.f32.mrb[48].mxu1 }
 0x250   : > { %v1808_v0 = vadd.f32 %v1807_v21, %v1163_v25  ;;  %v1165_v29 = vpop.f32.mrb[49].mxu1 }
 0x251   : > { %v1810_v12 = vadd.f32 %v1809_v59, %v1165_v29 }
 0x252   : > { %1343 = vst [vmem:[%s2466_s13 + $0x130] sm:$0xff] %v1808_v0 }
 0x253   : > { %1344 = vst.msk [vmem:[%s2466_s13 + $0x138] sm:$0xff] %vm1305_vm1, %v1810_v12  ;;  %v1169_v13 = vpop.f32.mrb[50].mxu1 }
 0x254   : > { %v1812_v32 = vadd.f32 %v1811_v62, %v1169_v13  ;;  %v1171_v33 = vpop.f32.mrb[51].mxu1 }
 0x255   : > { %v1814_v18 = vadd.f32 %v1813_v28, %v1171_v33 }
 0x256   : > { %1345 = vst [vmem:[%s2466_s13 + $0x140] sm:$0xff] %v1812_v32 }
 0x257   : > { %1346 = vst.msk [vmem:[%s2466_s13 + $0x148] sm:$0xff] %vm1305_vm1, %v1814_v18  ;;  %v1175_v14 = vpop.f32.mrb[52].mxu1 }
 0x258   : > { %v1816_v19 = vadd.f32 %v1815_v47, %v1175_v14  ;;  %v1177_v48 = vpop.f32.mrb[53].mxu1 }
 0x259   : > { %v1818_v15 = vadd.f32 %v1817_v40, %v1177_v48 }
 0x25a   : > { %1347 = vst [vmem:[%s2466_s13 + $0x150] sm:$0xff] %v1816_v19 }
 0x25b   : > { %1348 = vst.msk [vmem:[%s2466_s13 + $0x158] sm:$0xff] %vm1305_vm1, %v1818_v15  ;;  %v1181_v4 = vpop.f32.mrb[54].mxu1 }
 0x25c   : > { %v1820_v45 = vadd.f32 %v1819_v57, %v1181_v4  ;;  %v1183_v37 = vpop.f32.mrb[55].mxu1 }
 0x25d   : > { %v1822_v16 = vadd.f32 %v1821_v35, %v1183_v37 }
 0x25e   : > { %1349 = vst [vmem:[%s2466_s13 + $0x160] sm:$0xff] %v1820_v45 }
 0x25f   : > { %1350 = vst.msk [vmem:[%s2466_s13 + $0x168] sm:$0xff] %vm1305_vm1, %v1822_v16  ;;  %v1187_v17 = vpop.f32.mrb[56].mxu1 }
 0x260   : > { %v1824_v63 = vadd.f32 %v1823_v58, %v1187_v17  ;;  %v1189_v1 = vpop.f32.mrb[57].mxu1 }
 0x261   : > { %v1826_v3 = vadd.f32 %v1825_v44, %v1189_v1 }
 0x262   : > { %1351 = vst [vmem:[%s2466_s13 + $0x170] sm:$0xff] %v1824_v63 }
 0x263   : > { %1352 = vst.msk [vmem:[%s2466_s13 + $0x178] sm:$0xff] %vm1305_vm1, %v1826_v3  ;;  %v1193_v20 = vpop.f32.mrb[58].mxu1 }
 0x264   : > { %v1828_v31 = vadd.f32 %v1827_v26, %v1193_v20  ;;  %v1195_v6 = vpop.f32.mrb[59].mxu1 }
 0x265   : > { %v1830_v22 = vadd.f32 %v1829_v52, %v1195_v6 }
 0x266   : > { %1353 = vst [vmem:[%s2466_s13 + $0x180] sm:$0xff] %v1828_v31 }
 0x267   : > { %1354 = vst.msk [vmem:[%s2466_s13 + $0x188] sm:$0xff] %vm1305_vm1, %v1830_v22  ;;  %v1199_v46 = vpop.f32.mrb[60].mxu1 }
 0x268   : > { %v1832_v42 = vadd.f32 %v1831_v7, %v1199_v46  ;;  %v1201_v27 = vpop.f32.mrb[61].mxu1 }
 0x269   : > { %v1834_v24 = vadd.f32 %v1833_v60, %v1201_v27 }
 0x26a   : > { %1355 = vst [vmem:[%s2466_s13 + $0x190] sm:$0xff] %v1832_v42 }
 0x26b   : > { %1356 = vst.msk [vmem:[%s2466_s13 + $0x198] sm:$0xff] %vm1305_vm1, %v1834_v24  ;;  %v1205_v43 = vpop.f32.mrb[62].mxu1 }
 0x26c   : > { %v1836_v23 = vadd.f32 %v1835_v30, %v1205_v43  ;;  %v1207_v34 = vpop.f32.mrb[63].mxu1 }
 0x26d   : > { %v1838_v8 = vadd.f32 %v1837_v2, %v1207_v34 }
 0x26e   : > { %1357 = vst [vmem:[%s2466_s13 + $0x1a0] sm:$0xff] %v1836_v23 }
 0x26f   : > { %1358 = vst.msk [vmem:[%s2466_s13 + $0x1a8] sm:$0xff] %vm1305_vm1, %v1838_v8  ;;  %v1211_v36 = vpop.f32.mrb[0].mxu1 }
 0x270   : > { %v1212_v49 = vadd.f32 %v1211_v36, %v2450_v51  ;;  %v1213_v5 = vpop.f32.mrb[1].mxu1 }
 0x271   : > { %v1214_v9 = vadd.f32 %v1213_v5, %v2452_v53 }
 0x272   : > { %1359 = vst [vmem:[%s2466_s13 + $0x1b0] sm:$0xff] %v1212_v49 }
 0x273   : > { %1360 = vst.msk [vmem:[%s2466_s13 + $0x1b8] sm:$0xff] %vm1305_vm1, %v1214_v9  ;;  %v1217_v61 = vpop.f32.mrb[2].mxu1 }
 0x274   : > { %v1218_v50 = vadd.f32 %v1217_v61, %v2450_v51  ;;  %v1219_v38 = vpop.f32.mrb[3].mxu1 }
 0x275   : > { %v1220_v54 = vadd.f32 %v1219_v38, %v2452_v53 }
 0x276   : > { %1361 = vst [vmem:[%s2466_s13 + $0x1c0] sm:$0xff] %v1218_v50 }
 0x277   : > { %1362 = vst.msk [vmem:[%s2466_s13 + $0x1c8] sm:$0xff] %vm1305_vm1, %v1220_v54  ;;  %v1223_v39 = vpop.f32.mrb[4].mxu1 }
 0x278   : > { %v1224_v55 = vadd.f32 %v1223_v39, %v2450_v51  ;;  %v1225_v10 = vpop.f32.mrb[5].mxu1 }
 0x279   : > { %v1226_v56 = vadd.f32 %v1225_v10, %v2452_v53 }
 0x27a   : > { %1363 = vst [vmem:[%s2466_s13 + $0x1d0] sm:$0xff] %v1224_v55 }
 0x27b   : > { %1364 = vst.msk [vmem:[%s2466_s13 + $0x1d8] sm:$0xff] %vm1305_vm1, %v1226_v56  ;;  %v1229_v41 = vpop.f32.mrb[6].mxu1 }
 0x27c   : > { %v1230_v11 = vadd.f32 %v1229_v41, %v2450_v51  ;;  %v1231_v21 = vpop.f32.mrb[7].mxu1 }
 0x27d   : > { %v1232_v59 = vadd.f32 %v1231_v21, %v2452_v53 }
 0x27e   : > { %1365 = vst [vmem:[%s2466_s13 + $0x1e0] sm:$0xff] %v1230_v11 }
 0x27f   : > { %1366 = vst.msk [vmem:[%s2466_s13 + $0x1e8] sm:$0xff] %vm1305_vm1, %v1232_v59  ;;  %v1235_v25 = vpop.f32.mrb[8].mxu1 }
 0x280   : > { %v1236_v0 = vadd.f32 %v1235_v25, %v2450_v51  ;;  %v1237_v29 = vpop.f32.mrb[9].mxu1 }
 0x281   : > { %v1238_v12 = vadd.f32 %v1237_v29, %v2452_v53 }
 0x282   : > { %1367 = vst [vmem:[%s2466_s13 + $0x1f0] sm:$0xff] %v1236_v0 }
 0x283   : > { %1368 = vst.msk [vmem:[%s2466_s13 + $0x1f8] sm:$0xff] %vm1305_vm1, %v1238_v12 }
 0x284 PF: > { %s15_s20 = sadd.s32 1, %s1906_s20   ;;  %s2723_s18 = smov %s1902_s19 }
 0x285   : > { %p12_p5 = scmp.ge.s32.totalorder %s15_s20, 4   ;;  %s2724_s19 = smov %s2726_s21 }
 0x287   :  { %14 = sbr.rel (!%p12_p5) target bundleno = 2 (0x2), region = 79 }

</bundles_post_ra>
